<compile_context>
chip_gen: v6e
topology: v6e:2x2x1
jax: 0.10.0
libtpu: 0.0.40
codegen_flags: <defaults>
</compile_context>

<pallas_src>
import jax
import jax.numpy as jnp
from jax.experimental import pallas as pl
from jax.experimental.pallas import tpu as pltpu


def _mean_l2_kernel(pred_ref, tgt_ref, mask_ref, out_ref):
    """One grid step = one chunk of Bb batch elements.

    pred_ref : (Bb, T, D)  predictions for this batch chunk
    tgt_ref  : (Bb, D)     matching targets for this chunk
    mask_ref : (Bb, T)     matching mask rows for this chunk (0 on padding)
    out_ref  : (1, 1)      this step's partial sum of masked L2 distances
    """
    pred = pred_ref[...].astype(jnp.float32)            # (Bb, T, D)
    tgt = tgt_ref[...].astype(jnp.float32)               # (Bb, D)
    mask = mask_ref[...].astype(jnp.float32)              # (Bb, T)

    diff = pred - tgt[:, None, :]                          # (Bb, T, D)
    sq_sum = jnp.sum(diff * diff, axis=-1)                 # (Bb, T)
    l2 = jnp.sqrt(sq_sum)                                  # (Bb, T)

    out_ref[...] = jnp.sum(l2 * mask, axis=(0, 1), keepdims=True)


def _choose_batch_block(B, T, D, itemsize):
    """Pick Bb so the prediction block is ~4 MiB (or the whole batch if small).

    Bb is either the full batch (block dims == full dims) or a multiple of 8 so
    the (Bb, D) / (Bb, T) sublane dims tile cleanly.
    """
    target_bytes = 4 * 1024 * 1024
    per_batch = T * D * itemsize
    rows = max(1, target_bytes // per_batch)
    if rows >= B:
        return B
    # TODO(synk): additionally tile T when a single (T, D) batch row exceeds
    # the VMEM block budget (very large T*D).
    return max(8, (rows // 8) * 8)


def mean_l2_loss(predictions, labels, mask=None, scaling_factor=1.0):
    """Pallas implementation of MeanL2Loss.forward.

    predictions: (B, T, D) float
    labels:      (B,) int in [0, 7]
    mask:        optional (B, T) with 1 for valid tokens, 0 for padding
    returns scalar float32 loss (mean over all B*T tokens of masked L2 dist).
    """
    B, T, D = predictions.shape
    dtype = predictions.dtype

    # --- glue: (B, D) targets from the 3-bit (-s/+s) label encoding ---------
    bits = (labels[:, None] >> jnp.arange(2, -1, -1, dtype=labels.dtype)) & 1
    tgt3 = (scaling_factor * (2.0 * bits.astype(dtype) - 1.0)).astype(dtype)
    targets = jnp.zeros((B, D), dtype).at[:, :3].set(tgt3)

    if mask is None:
        mask_arr = jnp.ones((B, T), dtype)
    else:
        mask_arr = mask.astype(dtype)

    # --- batch-chunk tiling (pad batch with zero rows / zero mask) ----------
    itemsize = jnp.dtype(dtype).itemsize
    Bb = _choose_batch_block(B, T, D, itemsize)
    num_blocks = pl.cdiv(B, Bb)
    B_pad = num_blocks * Bb
    if B_pad != B:
        pad = B_pad - B
        predictions = jnp.pad(predictions, ((0, pad), (0, 0), (0, 0)))
        targets = jnp.pad(targets, ((0, pad), (0, 0)))
        mask_arr = jnp.pad(mask_arr, ((0, pad), (0, 0)))  # zero mask -> no-op rows

    partials = pl.pallas_call(
        _mean_l2_kernel,
        out_shape=jax.ShapeDtypeStruct((num_blocks, 1, 1), jnp.float32),
        grid_spec=pltpu.PrefetchScalarGridSpec(
            num_scalar_prefetch=0,
            grid=(num_blocks,),
            in_specs=[
                pl.BlockSpec((Bb, T, D), lambda i: (i, 0, 0)),
                pl.BlockSpec((Bb, D), lambda i: (i, 0)),
                pl.BlockSpec((Bb, T), lambda i: (i, 0)),
            ],
            out_specs=pl.BlockSpec((None, 1, 1), lambda i: (i, 0, 0)),
        ),
        compiler_params=pltpu.CompilerParams(
            # Every grid step writes an independent output block: safe to mark
            # parallel (shards across the 2 TensorCores on v7x; no-op on 1-TC chips).
            dimension_semantics=("parallel",)
        ),
    )(predictions, targets, mask_arr)

    # Final reduction + mean over ALL B*T tokens (matches reference semantics).
    return jnp.sum(partials) / jnp.float32(B * T)


def _reference_loss(predictions, labels, mask=None, scaling_factor=1.0):
    """Pure-JAX reference matching the PyTorch forward exactly."""
    B, T, D = predictions.shape
    bits = (labels[:, None] >> jnp.arange(2, -1, -1, dtype=labels.dtype)) & 1
    tgt3 = scaling_factor * (2.0 * bits.astype(predictions.dtype) - 1.0)
    targets = jnp.zeros((B, D), predictions.dtype).at[:, :3].set(tgt3)
    l2 = jnp.linalg.norm(predictions - targets[:, None, :], axis=-1)
    if mask is not None:
        l2 = l2 * mask.astype(predictions.dtype)
    return jnp.mean(l2)


if __name__ == "__main__":
    key = jax.random.PRNGKey(0)
    k_pred, k_lab, k_mask = jax.random.split(key, 3)

    B, T, D = 2, 8, 32
    predictions = jax.random.normal(k_pred, (B, T, D), dtype=jnp.float32)
    labels = jax.random.randint(k_lab, (B,), 0, 8, dtype=jnp.int32)
    mask = (jax.random.uniform(k_mask, (B, T)) > 0.3).astype(jnp.float32)

    # no-mask path
    loss = mean_l2_loss(predictions, labels, mask=None, scaling_factor=1.0)
    jax.block_until_ready(loss)
    ref = _reference_loss(predictions, labels, mask=None, scaling_factor=1.0)
    assert jnp.allclose(loss, ref, rtol=1e-5, atol=1e-5), (loss, ref)

    # masked path
    loss_m = mean_l2_loss(predictions, labels, mask=mask, scaling_factor=1.5)
    jax.block_until_ready(loss_m)
    ref_m = _reference_loss(predictions, labels, mask=mask, scaling_factor=1.5)
    assert jnp.allclose(loss_m, ref_m, rtol=1e-5, atol=1e-5), (loss_m, ref_m)

    # a slightly different shape (exercises odd B / T not multiples of 8/128)
    B2, T2, D2 = 5, 12, 48
    k_p2, k_l2, k_m2 = jax.random.split(jax.random.PRNGKey(1), 3)
    p2 = jax.random.normal(k_p2, (B2, T2, D2), dtype=jnp.float32)
    l2_ = jax.random.randint(k_l2, (B2,), 0, 8, dtype=jnp.int32)
    m2 = (jax.random.uniform(k_m2, (B2, T2)) > 0.5).astype(jnp.float32)
    out2 = mean_l2_loss(p2, l2_, mask=m2, scaling_factor=0.7)
    jax.block_until_ready(out2)
    ref2 = _reference_loss(p2, l2_, mask=m2, scaling_factor=0.7)
    assert jnp.allclose(out2, ref2, rtol=1e-5, atol=1e-5), (out2, ref2)

    print("KERNEL_OK")
</pallas_src>

<mosaic_0001>
module attributes {stable_mosaic.version = 11 : i64} {
  func.func @_mean_l2_kernel(%arg0: i32, %arg1: memref<2x8x32xf32, #tpu.memory_space<vmem>>, %arg2: memref<2x32xf32, #tpu.memory_space<vmem>>, %arg3: memref<2x8xf32, #tpu.memory_space<vmem>>, %arg4: memref<1x1x1xf32, #tpu.memory_space<vmem>>) attributes {dimension_semantics = [#tpu.dimension_semantics<parallel>], iteration_bounds = array<i64: 1>, scalar_prefetch = 0 : i64, scratch_operands = 0 : i64, tpu.core_type = #tpu.core_type<tc>, window_params = [{transform_indices = @transform_0, window_bounds = array<i64: 2, 8, 32>}, {transform_indices = @transform_1, window_bounds = array<i64: 2, 32>}, {transform_indices = @transform_2, window_bounds = array<i64: 2, 8>}, {transform_indices = @transform_3, window_bounds = array<i64: 1, 1, 1>}]} {
    %c0 = arith.constant 0 : index
    %c0_0 = arith.constant 0 : index
    %c0_1 = arith.constant 0 : index
    %0 = vector.load %arg1[%c0, %c0_0, %c0_1] : memref<2x8x32xf32, #tpu.memory_space<vmem>>, vector<2x8x32xf32>
    %c0_2 = arith.constant 0 : index
    %c0_3 = arith.constant 0 : index
    %1 = vector.load %arg2[%c0_2, %c0_3] : memref<2x32xf32, #tpu.memory_space<vmem>>, vector<2x32xf32>
    %c0_4 = arith.constant 0 : index
    %c0_5 = arith.constant 0 : index
    %2 = vector.load %arg3[%c0_4, %c0_5] : memref<2x8xf32, #tpu.memory_space<vmem>>, vector<2x8xf32>
    %3 = vector.shape_cast %1 : vector<2x32xf32> to vector<2x1x32xf32>
    %4 = vector.broadcast %3 : vector<2x1x32xf32> to vector<2x8x32xf32>
    %5 = arith.subf %0, %4 : vector<2x8x32xf32>
    %6 = arith.mulf %5, %5 : vector<2x8x32xf32>
    %cst = arith.constant dense<0.000000e+00> : vector<2x8xf32>
    %7 = vector.multi_reduction <add>, %6, %cst [2] : vector<2x8x32xf32> to vector<2x8xf32>
    %8 = math.sqrt %7 : vector<2x8xf32>
    %9 = arith.mulf %8, %2 : vector<2x8xf32>
    %10 = vector.shape_cast %9 : vector<2x8xf32> to vector<1x2x8xf32>
    %cst_6 = arith.constant dense<0.000000e+00> : vector<1xf32>
    %11 = vector.multi_reduction <add>, %10, %cst_6 [1, 2] : vector<1x2x8xf32> to vector<1xf32>
    %12 = vector.shape_cast %11 : vector<1xf32> to vector<1x1x1xf32>
    %13 = vector.extract %12[0, 0, 0] : f32 from vector<1x1x1xf32>
    %14 = vector.broadcast %13 : f32 to vector<1x1xf32>
    %c0_7 = arith.constant 0 : index
    %c0_8 = arith.constant 0 : index
    %c0_9 = arith.constant 0 : index
    %15 = vector.load %arg4[%c0_7, %c0_8, %c0_9] : memref<1x1x1xf32, #tpu.memory_space<vmem>>, vector<1x1x1xf32>
    %16 = vector.shape_cast %15 : vector<1x1x1xf32> to vector<1x1xf32>
    %17 = vector.shape_cast %14 : vector<1x1xf32> to vector<1x1x1xf32>
    tpu.vector_store %arg4[%c0_7, %c0_8, %c0_9], %17 {strides = array<i32>} : memref<1x1x1xf32, #tpu.memory_space<vmem>>, vector<1x1x1xf32>,
    return
  }
  func.func @transform_0(%arg0: i32) -> (i32, i32, i32) {
    %c0_i32 = arith.constant 0 : i32
    %c0_i32_0 = arith.constant 0 : i32
    %c0_i32_1 = arith.constant 0 : i32
    return %arg0, %c0_i32, %c0_i32_0 : i32, i32, i32
  }
  func.func @transform_1(%arg0: i32) -> (i32, i32) {
    %c0_i32 = arith.constant 0 : i32
    %c0_i32_0 = arith.constant 0 : i32
    return %arg0, %c0_i32 : i32, i32
  }
  func.func @transform_2(%arg0: i32) -> (i32, i32) {
    %c0_i32 = arith.constant 0 : i32
    %c0_i32_0 = arith.constant 0 : i32
    return %arg0, %c0_i32 : i32, i32
  }
  func.func @transform_3(%arg0: i32) -> (i32, i32, i32) {
    %c0_i32 = arith.constant 0 : i32
    %c0_i32_0 = arith.constant 0 : i32
    %c0_i32_1 = arith.constant 0 : i32
    return %arg0, %c0_i32, %c0_i32_0 : i32, i32, i32
  }
}

</mosaic_0001>

<bundles_post_ra>
// kernel: tpu_custom_call.1
= control target key start
LH: loop header
LB: loop body
LE: loop exit
PB: predicated region body
PF: predicated region fallthrough
CT: control target
= control target key end

     0   :  { %8 = vsyncpa [#allocation3], 0  ;;  %s294_s0 = inlined_call_operand.hbm [shape: f32[2,8,32], index: 0, kind: input, shape index: {}]   ;;  %s295_s1 = inlined_call_operand.hbm [shape: f32[2,32], index: 1, kind: input, shape index: {}]   ;;  %s296_s2 = inlined_call_operand.vmem [shape: f32[2,8], index: 2, kind: input, shape index: {}]   ;;  %s297_s3 = inlined_call_operand.hbm [shape: f32[1,1,1], index: 3, kind: output, shape index: {}]  }
   0x1   :  { %9 = vsyncpa [#allocation6], 0 }
   0x2   :  { %10 = vsyncpa [#allocation4], 0  ;;  %s255_s12 = smov [#allocation2]  }
   0x3   :  { %s16_s13 = sshll.u32 %s255_s12, 4  ;;  %s17_s13 = int_to_ptr.vmem [resolvable:$true] %s16_s13 }
   0x4   :  { %s197_s14 = scalar_lea.vmem %s17_s13, 256  ;;  %p202_p1 = scmp.lt.s32.totalorder %s17_s13, %s17_s13 }
   0x5   :  { %p198_p0 = scmp.ne.s32.totalorder %s17_s13, %s197_s14  ;;  %p203_p2 = scmp.lt.s32.totalorder %s197_s14, %s197_s14 }
   0x7   :  { %p204_p3 = por %p203_p2, %p202_p1 }
   0x9   :  { %p205_p4 = pnand %p204_p3, %p198_p0 }
   0xb   :  { %208 = shalt.err (!%p205_p4)
}
   0xc   :  { %s256_s15 = smov 128   ;;  %s257_s16 = smov 8  }
   0xd   :  { %22 = dma.hbm_to_vmem [thread:$0]  %s294_s0, 256, %s17_s13, [#allocation3], %s256_s15, %s256_s15, %s257_s16  }
   0xe   :  { %s258_s19 = smov [#allocation5]  }
   0xf   :  { %s29_s20 = sshll.u32 %s258_s19, 4  ;;  %s30_s20 = int_to_ptr.vmem [resolvable:$true] %s29_s20 }
  0x10   :  { %s217_s21 = scalar_lea.vmem %s30_s20, 32  ;;  %p222_p6 = scmp.lt.s32.totalorder %s30_s20, %s30_s20 }
  0x11   :  { %p218_p5 = scmp.ne.s32.totalorder %s30_s20, %s217_s21  ;;  %p223_p7 = scmp.lt.s32.totalorder %s217_s21, %s217_s21 }
  0x13   :  { %p224_p8 = por %p223_p7, %p222_p6 }
  0x15   :  { %p225_p9 = pnand %p224_p8, %p218_p5 }
  0x17   :  { %228 = shalt.err (!%p225_p9)
}
  0x18   :  { %32 = dma.hbm_to_vmem [thread:$0]  %s295_s1, 32, %s30_s20, [#allocation6]  }
  0x19   :  { %249 = dma.done.wait [#allocation3], 256  }
  0x1a   :  { %250 = vsyncadd [#allocation3], 4294967040 }
  0x1b   :  { %251 = dma.done.wait [#allocation6], 32  }
  0x1c   :  { %252 = vsyncadd [#allocation6], 4294967264  ;;  %v57_v0 = vlaneseq  ;;  %v259_v1 = vmov 1966171168   ;;  %v44_v11 = vld [vmem:[%s296_s2] sm:$0x3] }
  0x1d   :  { %v55_v2 = vunpack.c.l.s4 %v259_v1  ;;  %v173_v7 = vld.sshfl [vmem:[#allocation5] sm:$0x11 pattern:$0x75316420]  ;;  %v41_v12 = vld [vmem:[#allocation2] sm:$0xff]  ;;  %v42_v16 = vld [vmem:[#allocation2 + $0x8] sm:$0xff] }
  0x1e   :  { %v58_v3 = vshrl.u32 %v57_v0, 7  ;;  %v53_v9 = vcombine.high %v173_v7, %v173_v7  ;;  %vm82_vm0 = vcmask 261120   ;;  %v260_v25 = vmov 0   ;;  %s261_s1 = smov [#allocation7]  }
  0x1f   :  { %v56_v4 = vunpack.c.0.s8 %v55_v2  ;;  %183 = vset.pattern.permute.xlu0 %v260_v25  ;;  %184 = vset.pattern.permute.xlu1 %v260_v25  ;;  %v131_v26 = vand.u32 127, %v57_v0  ;;  %vm140_vm5 = vcmask 1041409   ;;  %vm143_vm6 = vcmask 58368   ;;  %s163_s2 = sshll.u32 %s261_s1, 4  ;;  %s164_s2 = int_to_ptr.vmem [resolvable:$true] %s163_s2 }
  0x20   :  { %v70_v6 = vsub.s32 0, %v58_v3  ;;  %v113_v8 = vsub.s32 1, %v58_v3  ;;  %vm155_vm7 = vcmask 0   ;;  %s229_s26 = scalar_lea.vmem %s164_s2, 16  ;;  %s233_s27 = scalar_lea.vmem %s164_s2, 32 }
  0x21   :  { %v59_v5 = vsub.s32 %v56_v4, %v58_v3  ;;  %v134_v27 = vsub.s32 %v131_v26, %v58_v3  ;;  %p230_p10 = scmp.ne.s32.totalorder %s164_s2, %s229_s26  ;;  %p234_p11 = scmp.lt.s32.totalorder %s164_s2, %s164_s2 }
  0x22   :  { %v107_v13 = vrot.slane %v44_v11, %v70_v6  ;;  %v114_v17 = vrot.slane %v44_v11, %v113_v8  ;;  %p235_p12 = scmp.lt.s32.totalorder %s233_s27, %s229_s26 }
  0x23   :  { %v60_v10 = vrot.slane %v173_v7, %v59_v5  ;;  %v67_v15 = vrot.slane %v53_v9, %v59_v5 }
  0x24   :  { %109 = vbcast.lane.b32.xlu1 %v107_v13, 256  ;;  %p236_p13 = por %p235_p12, %p234_p11 }
  0x25   :  { %v71_v14 = vrot.slane %v60_v10, %v70_v6  ;;  %v75_v19 = vrot.slane %v67_v15, %v70_v6 }
  0x26   :  { %p237_p0 = pnand %p236_p13, %p230_p10 }
  0x27   :  { %v78_v18 = vsub.f32 %v41_v12, %v71_v14  ;;  %v79_v21 = vsub.f32 %v42_v16, %v75_v19 }
  0x28   :  { %116 = vbcast.lane.b32.xlu1 %v114_v17, 256 }
  0x29   :  { %v80_v20 = vmul.f32 %v78_v18, %v78_v18  ;;  %v81_v23 = vmul.f32 %v79_v21, %v79_v21 }
  0x2b   :  { %v83_v22 = vsel %vm82_vm0, %v80_v20, 0.0  ;;  %v86_v24 = vsel %vm82_vm0, %v81_v23, 0.0 }
  0x2c   :  { %84 = vadd.xlane.f32.xlu0 %v83_v22 }
  0x30   :  { %87 = vadd.xlane.f32.xlu0 %v86_v24 }
  0x96   :  { %v110_v31 = vpop.permute.xlu1 %109 }
  0x9a   :  { %v117_v39 = vpop.permute.xlu1 %116 }
  0xb5   :  { %v85_v28 = vpop.xlane.xlu0 %84 }
  0xb6   :  { %185 = vrsqrt.f32 %v85_v28  ;;  %vm91_vm1 = vcmp.eq.f32.partialorder %v85_v28, inf  ;;  %v94_v33 = vand.u32 2147483648, %v85_v28  ;;  %vm93_vm2 = vcmp.eq.f32.partialorder %v85_v28, 0.0 }
  0xb9   :  { %v88_v29 = vpop.xlane.xlu0 %87 }
  0xba   :  { %187 = vrsqrt.f32 %v88_v29  ;;  %vm98_vm3 = vcmp.eq.f32.partialorder %v88_v29, inf  ;;  %v101_v40 = vand.u32 2147483648, %v88_v29  ;;  %vm100_vm4 = vcmp.eq.f32.partialorder %v88_v29, 0.0 }
  0xc3   :  { %v186_v30 = vpop.eup %185 }
  0xc4   :  { %v90_v32 = vmul.f32 %v186_v30, %v85_v28 }
  0xc6   :  { %v92_v34 = vsel %vm91_vm1, %v85_v28, %v90_v32 }
  0xc7   :  { %v188_v35 = vpop.eup %187  ;;  %v95_v36 = vsel %vm93_vm2, %v94_v33, %v92_v34 }
  0xc8   :  { %v120_v37 = vmul.f32 %v110_v31, %v95_v36  ;;  %v97_v38 = vmul.f32 %v188_v35, %v88_v29 }
  0xca   :  { %125 = vperm.xlu0 %183, %v120_v37   ;;  %v99_v41 = vsel %vm98_vm3, %v88_v29, %v97_v38 }
  0xcb   :  { %v102_v42 = vsel %vm100_vm4, %v101_v40, %v99_v41 }
  0xcc   :  { %v121_v43 = vmul.f32 %v117_v39, %v102_v42 }
  0xce   :  { %128 = vperm.xlu1 %184, %v121_v43  }
 0x145   :  { %v126_v44 = vpop.permute.xlu0 %125 }
 0x146   :  { %v135_v46 = vrot.slane %v126_v44, %v134_v27 }
 0x149   :  { %v129_v45 = vpop.permute.xlu1 %128 }
 0x14a   :  { %v139_v47 = vrot.slane %v129_v45, %v134_v27 }
 0x14c   :  { %v141_v48 = vsel %vm140_vm5, %v139_v47, %v135_v46 }
 0x14d   :  { %v144_v49 = vsel %vm143_vm6, %v141_v48, 0.0 }
 0x14e   :  { %145 = vadd.xlane.f32.xlu1 %v144_v49 }
 0x1d7   :  { %v146_v50 = vpop.xlane.xlu1 %145 }
 0x1d8   :  { %v147_v51 = vrot.slane %v146_v50, 4 }
 0x1da   :  { %v148_v52 = vadd.f32 %v147_v51, %v146_v50 }
 0x1dc   :  { %v149_v53 = vrot.slane %v148_v52, 2 }
 0x1de   :  { %v150_v54 = vadd.f32 %v149_v53, %v148_v52 }
 0x1e0   :  { %v151_v55 = vrot.slane %v150_v54, 1 }
 0x1e2   :  { %v152_v56 = vadd.f32 %v151_v55, %v150_v54 }
 0x1e4   :  { %174 = vpush %v152_v56 }
 0x215   :  { %s175_s25 = spop %174 }
 0x216   :  { %v154_v57 = vstv %s175_s25 }
 0x217   :  { %156 = vst.msk [vmem:[#allocation7] sm:$0x1] %vm155_vm7, %v154_v57 }
 0x218   :  { %240 = shalt.err (!%p237_p0)
}
 0x219   :  { %166 = dma.vmem_to_hbm [thread:$0]  %s164_s2, 16, %s297_s3, [#allocation4]  }
 0x21a   :  { %253 = dma.done.wait [#allocation4], 16  }
 0x21b   :  { %254 = vsyncadd [#allocation4], 4294967280 }
 0x21c   :  { %170 = vsyncpa [#allocation3], 1 }
 0x21d   :  { %171 = vsyncpa [#allocation6], 1 }
 0x21e   :  { %172 = vsyncpa [#allocation4], 1 }

</bundles_post_ra>
